<compile_context>
chip_gen: v5e
topology: v5e:2x2
jax: 0.10.0
libtpu: 0.0.40
codegen_flags: <defaults>
</compile_context>

<pallas_src>
import functools

import jax
import jax.numpy as jnp
from jax.experimental import pallas as pl
from jax.experimental.pallas import tpu as pltpu


# Rows per grid tile.  d_slot is tiny (~32) and the head widths are 24/12, so
# at TM=16384 (f32): x block 2 MiB + note 1.5 MiB + inst 0.75 MiB, x2 for
# double buffering ~= 8.5 MiB -> comfortably under the 32 MiB scoped VMEM
# budget on every generation (v5e/v6e/v7x).
_TM_MAX = 16384


def _round_up(x, m):
    return ((x + m - 1) // m) * m


def _fused_head_kernel(x_ref, wn_ref, bn_ref, wi_ref, bi_ref, note_ref, inst_ref):
    """note = x @ Wn_eff + bn_eff ; inst = x @ Wi_eff + bi_eff (f32 accumulate)."""
    x = x_ref[...]
    note = jnp.dot(x, wn_ref[...], preferred_element_type=jnp.float32) + bn_ref[...]
    inst = jnp.dot(x, wi_ref[...], preferred_element_type=jnp.float32) + bi_ref[...]
    note_ref[...] = note.astype(note_ref.dtype)
    inst_ref[...] = inst.astype(inst_ref.dtype)


def fuse_params(params, linear=False):
    """Call-once preprocessing: fold fc1 (if present) into the two heads.

    Mathematically identical to fc_head(fc1(x)):
        (x @ W1 + b1) @ Wh + bh == x @ (W1 @ Wh) + (b1 @ Wh + bh)
    Done in f32 for accuracy; these are tiny (d_slot x num_*) matmuls.
    """
    f32 = jnp.float32
    wn = params["w_note"].astype(f32)
    bn = params["b_note"].astype(f32)
    wi = params["w_inst"].astype(f32)
    bi = params["b_inst"].astype(f32)
    if not linear:
        w1 = params["w1"].astype(f32)
        b1 = params["b1"].astype(f32)
        bn = jnp.dot(b1, wn) + bn
        bi = jnp.dot(b1, wi) + bi
        wn = jnp.dot(w1, wn)
        wi = jnp.dot(w1, wi)
    return {"w_note": wn, "b_note": bn, "w_inst": wi, "b_inst": bi}


@jax.jit
def multi_head_classifier(x, fused):
    """Pallas forward pass (hot path).

    x: [..., d_slot]
    fused: output of fuse_params() -- per-head effective weights/biases.
    returns (note_logits [..., num_notes], inst_logits [..., num_instruments])
    """
    *lead, d_slot = x.shape
    M = 1
    for d in lead:
        M *= d
    x2 = x.reshape(M, d_slot)

    # Cast weights to the activation dtype for a homogeneous MXU feed; keep the
    # biases in f32 (they add onto the f32 accumulator).
    wn = fused["w_note"].astype(x.dtype)
    wi = fused["w_inst"].astype(x.dtype)
    bn = fused["b_note"].astype(jnp.float32)
    bi = fused["b_inst"].astype(jnp.float32)
    num_notes = wn.shape[1]
    num_inst = wi.shape[1]

    # Row tiling: tm is a multiple of 8 sublanes; prefer >= 2 tiles so the
    # "parallel" row axis can shard across both TensorCores on v7x.  The ragged
    # last block (M % tm != 0) is handled by Pallas (masked edge writes), so no
    # input padding and no output de-pad slice are needed.
    m8 = max(8, _round_up(M, 8))
    tm = min(_TM_MAX, _round_up(pl.cdiv(m8, 2), 8))
    num_tiles = pl.cdiv(M, tm)

    row_spec = pl.BlockSpec((tm, d_slot), lambda i: (i, 0))

    def resident(a):
        # Whole-array block + constant index_map: DMA'd once, stays VMEM-resident.
        return pl.BlockSpec(a.shape, lambda i: (0,) * a.ndim)

    note2, inst2 = pl.pallas_call(
        _fused_head_kernel,
        out_shape=(
            jax.ShapeDtypeStruct((M, num_notes), x.dtype),
            jax.ShapeDtypeStruct((M, num_inst), x.dtype),
        ),
        grid=(num_tiles,),
        in_specs=[row_spec, resident(wn), resident(bn), resident(wi), resident(bi)],
        out_specs=(
            pl.BlockSpec((tm, num_notes), lambda i: (i, 0)),
            pl.BlockSpec((tm, num_inst), lambda i: (i, 0)),
        ),
        compiler_params=pltpu.CompilerParams(
            dimension_semantics=("parallel",),   # shard rows across TCs (v7x)
            vmem_limit_bytes=32 * 1024 * 1024,   # explicit; safe on 64 MiB v7x,
                                                 # above v5e's 16 MiB scoped default
        ),
    )(x2, wn, bn, wi, bi)

    note = note2.reshape(*lead, num_notes)
    inst = inst2.reshape(*lead, num_inst)
    return note, inst


def init_params(key, d_slot, num_notes, num_instruments, dtype=jnp.float32):
    """Deterministic synthetic init (PyTorch-Linear-like uniform fan-in bound).

    Weights are stored as (in_features, out_features)."""
    ks = jax.random.split(key, 6)
    bound = 1.0 / (d_slot ** 0.5)

    def u(k, shape):
        return jax.random.uniform(k, shape, dtype, minval=-bound, maxval=bound)

    return {
        "w1": u(ks[0], (d_slot, d_slot)),
        "b1": u(ks[1], (1, d_slot)),
        "w_note": u(ks[2], (d_slot, num_notes)),
        "b_note": u(ks[3], (1, num_notes)),
        "w_inst": u(ks[4], (d_slot, num_instruments)),
        "b_inst": u(ks[5], (1, num_instruments)),
    }


def _reference(x, params, linear=False):
    """Pure-JAX reference matching the PyTorch forward (two-matmul form)."""
    h = x if linear else jnp.dot(x, params["w1"]) + params["b1"][0]
    note = jnp.dot(h, params["w_note"]) + params["b_note"][0]
    inst = jnp.dot(h, params["w_inst"]) + params["b_inst"][0]
    return note, inst


if __name__ == "__main__":
    d_slot, num_notes, num_instruments = 32, 24, 12
    key = jax.random.PRNGKey(0)
    k_x, k_p, k_x2 = jax.random.split(key, 3)
    params = init_params(k_p, d_slot, num_notes, num_instruments)

    # Hoisted, call-once weight fusion (not in the per-call hot path).
    fused = jax.block_until_ready(fuse_params(params, linear=False))
    fused_lin = jax.block_until_ready(fuse_params(params, linear=True))

    # --- small shape consistent with the module: batch=2, slots=8 ---
    B, S = 2, 8
    x = jax.random.normal(k_x, (B, S, d_slot), jnp.float32)

    note_logits, inst_logits = multi_head_classifier(x, fused)
    jax.block_until_ready((note_logits, inst_logits))
    ref_note, ref_inst = _reference(x, params, linear=False)
    assert note_logits.shape == (B, S, num_notes)
    assert inst_logits.shape == (B, S, num_instruments)
    assert jnp.allclose(note_logits, ref_note, atol=1e-4, rtol=1e-4)
    assert jnp.allclose(inst_logits, ref_inst, atol=1e-4, rtol=1e-4)

    # linear=True path (fc1 skipped)
    note_l, inst_l = multi_head_classifier(x, fused_lin)
    jax.block_until_ready((note_l, inst_l))
    ref_note_l, ref_inst_l = _reference(x, params, linear=True)
    assert jnp.allclose(note_l, ref_note_l, atol=1e-4, rtol=1e-4)
    assert jnp.allclose(inst_l, ref_inst_l, atol=1e-4, rtol=1e-4)

    # --- larger, ragged M to exercise the multi-tile grid + masked edge block ---
    B2, S2 = 4, 1500                              # M = 6000 -> 2 tiles of 3000 rows
    x_big = jax.random.normal(k_x2, (B2, S2, d_slot), jnp.float32)
    note_b, inst_b = multi_head_classifier(x_big, fused)
    jax.block_until_ready((note_b, inst_b))
    ref_note_b, ref_inst_b = _reference(x_big, params, linear=False)
    assert note_b.shape == (B2, S2, num_notes)
    assert inst_b.shape == (B2, S2, num_instruments)
    assert jnp.allclose(note_b, ref_note_b, atol=1e-4, rtol=1e-4)
    assert jnp.allclose(inst_b, ref_inst_b, atol=1e-4, rtol=1e-4)

    print("KERNEL_OK")
</pallas_src>

<mosaic_0001>
module attributes {stable_mosaic.version = 11 : i64} {
  func.func @_fused_head_kernel(%arg0: i32, %arg1: memref<8x32xf32, #tpu.memory_space<vmem>>, %arg2: memref<32x24xf32, #tpu.memory_space<vmem>>, %arg3: memref<1x24xf32, #tpu.memory_space<vmem>>, %arg4: memref<32x12xf32, #tpu.memory_space<vmem>>, %arg5: memref<1x12xf32, #tpu.memory_space<vmem>>, %arg6: memref<8x24xf32, #tpu.memory_space<vmem>>, %arg7: memref<8x12xf32, #tpu.memory_space<vmem>>) attributes {dimension_semantics = [#tpu.dimension_semantics<parallel>], iteration_bounds = array<i64: 2>, scalar_prefetch = 0 : i64, scratch_operands = 0 : i64, tpu.core_type = #tpu.core_type<tc>, window_params = [{transform_indices = @transform_0, window_bounds = array<i64: 8, 32>}, {pipeline_mode = #tpu.pipeline_mode<synchronous>, transform_indices = @transform_1, window_bounds = array<i64: 32, 24>}, {pipeline_mode = #tpu.pipeline_mode<synchronous>, transform_indices = @transform_2, window_bounds = array<i64: 1, 24>}, {pipeline_mode = #tpu.pipeline_mode<synchronous>, transform_indices = @transform_3, window_bounds = array<i64: 32, 12>}, {pipeline_mode = #tpu.pipeline_mode<synchronous>, transform_indices = @transform_4, window_bounds = array<i64: 1, 12>}, {transform_indices = @transform_5, window_bounds = array<i64: 8, 24>}, {transform_indices = @transform_6, window_bounds = array<i64: 8, 12>}]} {
    %c0 = arith.constant 0 : index
    %c0_0 = arith.constant 0 : index
    %0 = vector.load %arg1[%c0, %c0_0] : memref<8x32xf32, #tpu.memory_space<vmem>>, vector<8x32xf32>
    %c0_1 = arith.constant 0 : index
    %c0_2 = arith.constant 0 : index
    %1 = vector.load %arg2[%c0_1, %c0_2] : memref<32x24xf32, #tpu.memory_space<vmem>>, vector<32x24xf32>
    %cst = arith.constant dense<0.000000e+00> : vector<8x24xf32>
    %2 = tpu.matmul %0, %1, %cst {dimension_numbers = #tpu.dot_dimension_numbers<[1], [0], [0], [1], [0, 0, 1, 1], [], []>} : vector<8x32xf32>, vector<32x24xf32>, vector<8x24xf32> -> vector<8x24xf32>
    %c0_3 = arith.constant 0 : index
    %c0_4 = arith.constant 0 : index
    %3 = vector.load %arg3[%c0_3, %c0_4] : memref<1x24xf32, #tpu.memory_space<vmem>>, vector<1x24xf32>
    %4 = vector.broadcast %3 : vector<1x24xf32> to vector<8x24xf32>
    %5 = arith.addf %2, %4 : vector<8x24xf32>
    %c0_5 = arith.constant 0 : index
    %c0_6 = arith.constant 0 : index
    %6 = vector.load %arg4[%c0_5, %c0_6] : memref<32x12xf32, #tpu.memory_space<vmem>>, vector<32x12xf32>
    %cst_7 = arith.constant dense<0.000000e+00> : vector<8x12xf32>
    %7 = tpu.matmul %0, %6, %cst_7 {dimension_numbers = #tpu.dot_dimension_numbers<[1], [0], [0], [1], [0, 0, 1, 1], [], []>} : vector<8x32xf32>, vector<32x12xf32>, vector<8x12xf32> -> vector<8x12xf32>
    %c0_8 = arith.constant 0 : index
    %c0_9 = arith.constant 0 : index
    %8 = vector.load %arg5[%c0_8, %c0_9] : memref<1x12xf32, #tpu.memory_space<vmem>>, vector<1x12xf32>
    %9 = vector.broadcast %8 : vector<1x12xf32> to vector<8x12xf32>
    %10 = arith.addf %7, %9 : vector<8x12xf32>
    %c0_10 = arith.constant 0 : index
    %c0_11 = arith.constant 0 : index
    %11 = vector.load %arg6[%c0_10, %c0_11] : memref<8x24xf32, #tpu.memory_space<vmem>>, vector<8x24xf32>
    tpu.vector_store %arg6[%c0_10, %c0_11], %5 {strides = array<i32>} : memref<8x24xf32, #tpu.memory_space<vmem>>, vector<8x24xf32>,
    %c0_12 = arith.constant 0 : index
    %c0_13 = arith.constant 0 : index
    %12 = vector.load %arg7[%c0_12, %c0_13] : memref<8x12xf32, #tpu.memory_space<vmem>>, vector<8x12xf32>
    tpu.vector_store %arg7[%c0_12, %c0_13], %10 {strides = array<i32>} : memref<8x12xf32, #tpu.memory_space<vmem>>, vector<8x12xf32>,
    return
  }
  func.func @transform_0(%arg0: i32) -> (i32, i32) {
    %c0_i32 = arith.constant 0 : i32
    %c0_i32_0 = arith.constant 0 : i32
    return %arg0, %c0_i32 : i32, i32
  }
  func.func @transform_1(%arg0: i32) -> (i32, i32) {
    %c0_i32 = arith.constant 0 : i32
    %c0_i32_0 = arith.constant 0 : i32
    %c0_i32_1 = arith.constant 0 : i32
    return %c0_i32, %c0_i32_0 : i32, i32
  }
  func.func @transform_2(%arg0: i32) -> (i32, i32) {
    %c0_i32 = arith.constant 0 : i32
    %c0_i32_0 = arith.constant 0 : i32
    %c0_i32_1 = arith.constant 0 : i32
    return %c0_i32, %c0_i32_0 : i32, i32
  }
  func.func @transform_3(%arg0: i32) -> (i32, i32) {
    %c0_i32 = arith.constant 0 : i32
    %c0_i32_0 = arith.constant 0 : i32
    %c0_i32_1 = arith.constant 0 : i32
    return %c0_i32, %c0_i32_0 : i32, i32
  }
  func.func @transform_4(%arg0: i32) -> (i32, i32) {
    %c0_i32 = arith.constant 0 : i32
    %c0_i32_0 = arith.constant 0 : i32
    %c0_i32_1 = arith.constant 0 : i32
    return %c0_i32, %c0_i32_0 : i32, i32
  }
  func.func @transform_5(%arg0: i32) -> (i32, i32) {
    %c0_i32 = arith.constant 0 : i32
    %c0_i32_0 = arith.constant 0 : i32
    return %arg0, %c0_i32 : i32, i32
  }
  func.func @transform_6(%arg0: i32) -> (i32, i32) {
    %c0_i32 = arith.constant 0 : i32
    %c0_i32_0 = arith.constant 0 : i32
    return %arg0, %c0_i32 : i32, i32
  }
}

</mosaic_0001>

<bundles_post_ra>
// kernel: multi_head_classifier.1
= control target key start
LH: loop header
LB: loop body
LE: loop exit
PB: predicated region body
PF: predicated region fallthrough
CT: control target
= control target key end

     0   :  { %s787_s0 = inlined_call_operand.vmem [shape: f32[16,32], index: 0, kind: input, shape index: {}]   ;;  %s788_s1 = inlined_call_operand.vmem [shape: f32[32,24], index: 1, kind: input, shape index: {}]   ;;  %s789_s2 = inlined_call_operand.vmem [shape: f32[1,24], index: 2, kind: input, shape index: {}]   ;;  %s790_s3 = inlined_call_operand.vmem [shape: f32[32,12], index: 3, kind: input, shape index: {}]   ;;  %s791_s4 = inlined_call_operand.vmem [shape: f32[1,12], index: 4, kind: input, shape index: {}]   ;;  %s792_s5 = inlined_call_operand.hbm [shape: f32[16,24], index: 5, kind: output, shape index: {0}]   ;;  %s793_s6 = inlined_call_operand.hbm [shape: f32[16,12], index: 6, kind: output, shape index: {1}]  }
   0x1   :  { %794 = sst [smem:[#allocation8_spill]] %s787_s0 }
   0x2   :  { %12 = vsyncpa [#allocation3], 0 }
   0x3   :  { %14 = vsyncpa [#allocation3 + $0x1], 0 }
   0x4   :  { %15 = vsyncpa [#allocation5], 0 }
   0x5   :  { %17 = vsyncpa [#allocation5 + $0x1], 0  ;;  %s642_s21 = smov 0   ;;  %s644_s22 = smov 0  }
   0x6   :  { %s646_s23 = smov 0   ;;  %s648_s24 = smov 0  }
   0x7 LB: > { %s663_s25 = sadd.s32 4294967295, %s605_s24   ;;  %s450_s26 = sadd.s32 4294967294, %s605_s24   ;;  %s605_s24 = sphi %s648_s24, %s801_s24   ;;  %s601_s23 = sphi %s646_s23, %s800_s23   ;;  %s597_s22 = sphi %s644_s22, %s799_s22   ;;  %s593_s21 = sphi %s642_s21, %s798_s21  }
   0x8   : > { %s667_s27 = sadd.s32 1, %s605_s24   ;;  %s140_s28 = sadd.s32 1, %s601_s23 }
   0x9   : > { %s137_s29 = ssub.s32 %s605_s24, %s667_s27  ;;  %p150_p0 = scmp.ne.s32.totalorder %s601_s23, %s597_s22 }
   0xa   : > { %p138_p1 = scmp.eq.s32.totalorder %s137_s29, 0  ;;  %p151_p2 = scmp.eq.s32.totalorder %s663_s25, 1 }
   0xb   : > { %p156_p3 = scmp.ne.s32.totalorder %s597_s22, %s593_s21  ;;  %p157_p4 = scmp.eq.s32.totalorder %s450_s26, 1 }
   0xc   : > { %s678_s30 = scalar_select %p138_p1, %s601_s23, %s140_s28  }
   0xd   : > { %p680_p5 = por %p151_p2, %p150_p0  ;;  %p684_p6 = por %p157_p4, %p156_p3 }
   0xe   : > { %p453_p7 = scmp.ge.s32.totalorder %s605_s24, 1  ;;  %p220_p8 = scmp.lt.s32.totalorder %s605_s24, 3 }
  0x10   : > { %p221_p9 = pnand %p453_p7, %p220_p8 }
  0x11   : > { %p254_p10 = scmp.lt.s32.totalorder (!%p221_p9), %s663_s25, 1  ;;  %s797_s0 = sld [smem:[#allocation8_spill]] (!%p221_p9) }
  0x12   : > { %224 = sbr.rel (%p221_p9) target bundleno = 174 (0xae), region = 40  ;;  %s720_s15 = sand.u32 (!%p221_p9), 1, %s597_s22  }
  0x13   : > { %s454_s16 = sshll.u32 (!%p221_p9), %s720_s15, 3  ;;  %s461_s17 = sshll.u32 (!%p221_p9), %s663_s25, 3 }
  0x14   : > { %s339_s20 = scalar_lea.hbm (!%p221_p9), %s792_s5, %s461_s17  ;;  %s353_s29 = scalar_lea.hbm (!%p221_p9), %s793_s6, %s461_s17 }
  0x15   : > { %s246_s13 = scalar_lea.vmem (!%p221_p9), [#allocation2], %s454_s16  ;;  %s357_s19 = sshll.u32 (!%p221_p9), %s353_s29, 4  ;;  %s741_s19 = int_to_ptr.hbm [resolvable:$true] %s357_s19 }
  0x16   : > { %s324_s17 = scalar_lea.sflag (!%p221_p9), [#allocation3], %s720_s15  ;;  %s531_s29 = scalar_lea.hbm (!%p221_p9), %s792_s5, 16 }
  0x17   : > { %v262_v0 = vld [vmem:[%s788_s1 + $0x18] sm:$0xff]  ;;  %v261_v2 = vld [vmem:[%s788_s1 + $0x10] sm:$0xff]  ;;  %v260_v4 = vld [vmem:[%s788_s1 + $0x8] sm:$0xff]  ;;  %s255_s26 = scalar_select %p254_p10, %s663_s25, 1  ;;  %vm267_vm0 = vcmask 261120   ;;  %vm319_vm1 = vcmask 195584  }
  0x18   : > { %v294_v1 = vld [vmem:[%s790_s3 + $0x18] sm:$0xff]  ;;  %283 = vmatpush.msra.mxu0 %v262_v0  ;;  %v293_v3 = vld [vmem:[%s790_s3 + $0x10] sm:$0xff]  ;;  %v292_v5 = vld [vmem:[%s790_s3 + $0x8] sm:$0xff]  ;;  %s343_s25 = sshll.u32 %s339_s20, 4  ;;  %vm321_vm2 = vcmask 97280   ;;  %s344_s25 = int_to_ptr.hbm [resolvable:$true] %s343_s25 }
  0x19   : > { %311 = vmatpush.msra.mxu1 %v294_v1  ;;  %v259_v6 = vld [vmem:[%s788_s1] sm:$0xff]  ;;  %s456_s11 = sshll.u32 %s255_s26, 3 }
  0x1a   : > { %284 = vmatpush.msra.mxu0 %v261_v2  ;;  %v291_v7 = vld [vmem:[%s790_s3] sm:$0xff]  ;;  %s257_s14 = scalar_lea.vmem %s797_s0, %s456_s11  ;;  %s736_s0 = scalar_lea.vmem [#allocation4], %s454_s16 }
  0x1b   : > { %312 = vmatpush.msra.mxu1 %v293_v3  ;;  %v258_v8 = vld [vmem:[%s257_s14] sm:$0xff]  ;;  %s341_s14 = sshll.u32 %s246_s13, 4  ;;  %s355_s18 = sshll.u32 %s736_s0, 4  ;;  %s342_s14 = int_to_ptr.vmem [resolvable:$true] %s341_s14  ;;  %s739_s18 = int_to_ptr.vmem [resolvable:$true] %s355_s18 }
  0x1c   : > { %285 = vmatpush.msra.mxu0 %v260_v4  ;;  %v509_v9 = vld [vmem:[%s789_s2] ss:$0 sm:$0xff]  ;;  %s525_s16 = sshra.s32 %s344_s25, 4  ;;  %s526_s16 = int_to_ptr.hbm [resolvable:$true] %s525_s16 }
  0x1d   : > { %313 = vmatpush.msra.mxu1 %v292_v5  ;;  %v510_v10 = vld [vmem:[%s791_s4] ss:$0 sm:$0xff]  ;;  %s527_s20 = scalar_lea.hbm %s526_s16, 8  ;;  %p532_p0 = scmp.lt.s32.totalorder %s526_s16, %s792_s5 }
  0x1e   : > { %286 = vmatpush.msra.mxu0 %v259_v6  ;;  %p528_p11 = scmp.ne.s32.totalorder %s526_s16, %s527_s20  ;;  %p533_p1 = scmp.lt.s32.totalorder %s531_s29, %s527_s20 }
  0x1f   : > { %314 = vmatpush.msra.mxu1 %v291_v7  ;;  %457 = vmatmul.msk.f32.vlgmr.msra.gmra.mxu0 %vm267_vm0, %v258_v8 }
  0x20   : > { %458 = vmatmul.msk.f32.vlgmr.msra.gmra.mxu1 %vm267_vm0, %v258_v8  ;;  %p529_p12 = pnand %p528_p11, %p680_p5  ;;  %p534_p2 = por %p533_p1, %p532_p0 }
  0x22   : > { %p530_p13 = pneg %p529_p12 }
  0x24   : > { %p535_p3 = pnand %p534_p2, %p530_p13 }
  0x9c   : > { %v288_v11 = vpop.f32.mrf.mxu0 }
  0x9d   : > { %v316_v12 = vpop.f32.mrf.mxu1  ;;  %v289_v13 = vadd.f32 %v509_v9, %v288_v11 }
  0x9e   : > { %v317_v14 = vadd.f32 %v510_v10, %v316_v12 }
  0x9f   : > { %320 = vst.msk [vmem:[%s246_s13] sm:$0xff] %vm319_vm1, %v289_v13 }
  0xa0   : > { %538 = shalt.err (!%p535_p3)
}
  0xa1   : > { %465 = dma.vmem_to_hbm [thread:$0]  (%p680_p5), %s342_s14, 128, %s344_s25, %s324_s17   ;;  %322 = vst.msk [vmem:[%s736_s0] sm:$0xff] %vm321_vm2, %v317_v14 }
  0xa2   : > { %s329_s11 = scalar_lea.sflag [#allocation5], %s720_s15  ;;  %s553_s12 = sshra.s32 %s741_s19, 4  ;;  %s554_s12 = int_to_ptr.hbm [resolvable:$true] %s553_s12 }
  0xa3   : > { %s555_s13 = scalar_lea.hbm %s554_s12, 8  ;;  %s559_s26 = scalar_lea.hbm %s793_s6, 16 }
  0xa4   : > { %p556_p4 = scmp.ne.s32.totalorder %s554_s12, %s555_s13  ;;  %p560_p9 = scmp.lt.s32.totalorder %s554_s12, %s793_s6 }
  0xa5   : > { %p561_p10 = scmp.lt.s32.totalorder %s559_s26, %s555_s13 }
  0xa6   : > { %p557_p7 = pnand %p556_p4, %p680_p5 }
  0xa7   : > { %p562_p11 = por %p561_p10, %p560_p9 }
  0xa8   : > { %p558_p8 = pneg %p557_p7 }
  0xaa   : > { %p563_p12 = pnand %p562_p11, %p558_p8 }
  0xac   : > { %566 = shalt.err (!%p563_p12)
}
  0xad   : > { %466 = dma.vmem_to_hbm [thread:$0]  (%p680_p5), %s739_s18, 128, %s741_s19, %s329_s11  }
  0xae PF: > { %p476_p13 = scmp.ge.s32.totalorder %s605_s24, 2  ;;  %s369_s0 = sand.u32 1, %s593_s21  }
  0xaf   : > { %s370_s15 = scalar_lea.sflag [#allocation3], %s369_s0 }
  0xb0   : > { %p470_p0 = pnand %p476_p13, %p684_p6 }
  0xb2   : > { %p471_p1 = pneg %p470_p0 }
  0xb4   : > { %584 = dma.done.wait (%p471_p1), %s370_s15, 128  }
  0xb5   : > { %586 = vsyncadd (%p471_p1), %s370_s15, 4294967168  ;;  %s380_s14 = scalar_lea.sflag [#allocation5], %s369_s0 }
  0xb6   : > { %588 = dma.done.wait (%p471_p1), %s380_s14, 128  }
  0xb7   : > { %590 = vsyncadd (%p471_p1), %s380_s14, 4294967168  ;;  %p20_p5 = scmp.ge.s32.totalorder %s667_s27, 4   ;;  %s798_s21 = smov %s597_s22 }
  0xb8   : > { %s799_s22 = smov %s601_s23  ;;  %s800_s23 = smov %s678_s30 }
  0xb9   : > { %s801_s24 = smov %s667_s27  ;;  %22 = sbr.rel (!%p20_p5) target bundleno = 7 (0x7), region = 92 }
  0xbe   :  { %386 = vsyncpa [#allocation3], 1 }
  0xbf   :  { %388 = vsyncpa [#allocation3 + $0x1], 1 }
  0xc0   :  { %389 = vsyncpa [#allocation5], 1 }
  0xc1   :  { %391 = vsyncpa [#allocation5 + $0x1], 1 }

</bundles_post_ra>
